<compile_context>
chip_gen: v7x
topology: tpu7x:2x2x1
jax: 0.10.0
libtpu: 0.0.40
codegen_flags: <defaults>
</compile_context>

<pallas_src>
import jax
import jax.numpy as jnp
from jax.experimental import pallas as pl
from jax.experimental.pallas import tpu as pltpu


# ----------------------------------------------------------------------------
# Pallas kernel: fused feature-major MLP (matmul + bias + activation per layer)
# ----------------------------------------------------------------------------
def _make_mlp_kernel(num_layers, activation, compute_dtype):
    """Kernel signature: (x_ref, w0, b0, ..., w{L-1}, b{L-1}, o_ref).

    x_ref : (batch_tile, in_dim)   f32, batch-tiled; cast + transposed in-kernel
    w_i   : (out_i, in_i)          compute dtype, whole-array VMEM resident
    b_i   : (out_i, 1)             f32,           whole-array VMEM resident
    o_ref : (out_dim, batch_tile)  feature-major -> lane-dense stores
    """

    def kernel(x_ref, *refs):
        o_ref = refs[-1]
        params = refs[:-1]
        # Feature-major: transpose once on the XLU (otherwise idle), cast on the
        # VPU so no wrapper-side f32->bf16 materialization is needed.
        h = x_ref[...].T.astype(compute_dtype)                # (in_dim, tile)
        for i in range(num_layers):
            w = params[2 * i][...]                             # (out_i, in_i)
            b = params[2 * i + 1][...]                         # (out_i, 1) f32
            # bf16 x bf16 -> f32 accumulate on the MXU; (out_i, tile) is lane-dense.
            acc = jnp.dot(w, h, preferred_element_type=jnp.float32) + b
            if i < num_layers - 1:
                # activation_class() (nn.ReLU in the toy config); f32 VPU math,
                # re-pack to the MXU dtype only for the next matmul.
                h = activation(acc).astype(compute_dtype)
            else:
                o_ref[...] = acc.astype(o_ref.dtype)

    return kernel


# ----------------------------------------------------------------------------
# Wrapper
# ----------------------------------------------------------------------------
def mlp_pallas(x, weights, biases, *, batch_tile=4096, use_bf16=True,
               out_dtype=jnp.float32, return_feature_major=False,
               activation=lambda t: jnp.maximum(t, 0.0)):
    """Fused MLP forward.

    x:       (B, D_in) float32
    weights: list of (D_out_i, D_in_i) float32 (torch-native nn.Linear layout)
    biases:  list of (D_out_i,) float32
    use_bf16: feed bf16 operands to the MXU (f32 accumulate).  This intentionally
        differs from a pure-f32 torch forward at the ~1e-3 level; pass False for
        f32 operands.
    return_feature_major: if True, return the kernel-native (D_out, B) layout and
        skip the tiny wrapper-side transpose back to (B, D_out).
    """
    num_layers = len(weights)
    B, in_dim = x.shape
    assert weights[0].shape[1] == in_dim
    out_dim = weights[-1].shape[0]

    # --- batch tiling ---------------------------------------------------------
    # Legality: input block (tile, in_dim) needs tile % 8 == 0 (or tile == B);
    # output block (out_dim, tile) needs tile % 128 == 0 (or tile == B).
    # For B >= 256 guarantee >= 2 grid steps so the "parallel" batch axis can be
    # sharded across both v7x TensorCores; small B runs as a single full block.
    def _round_up(v, m):
        return ((v + m - 1) // m) * m

    tile_cap = max(128, (batch_tile // 128) * 128)
    if B < 256:
        tile = B
    else:
        tile = min(tile_cap, _round_up((B + 1) // 2, 128))
    grid = pl.cdiv(B, tile)

    compute_dtype = jnp.bfloat16 if use_bf16 else x.dtype

    # --- params: whole-array VMEM residents (no per-step double-buffering) -----
    params = []
    in_specs = [pl.BlockSpec((tile, in_dim), lambda i: (i, 0))]
    vmem_whole = pl.BlockSpec(memory_space=pltpu.MemorySpace.VMEM)
    for w, b in zip(weights, biases):
        params.append(w.astype(compute_dtype))                 # (out_i, in_i)
        params.append(b.reshape(-1, 1).astype(jnp.float32))    # (out_i, 1) f32
        in_specs.append(vmem_whole)
        in_specs.append(vmem_whole)

    out_spec = pl.BlockSpec((out_dim, tile), lambda i: (0, i))

    # --- VMEM budget (explicit so v7x 64 MiB / v5e 16 MiB-scoped stay legal) ----
    x_bytes = jnp.dtype(x.dtype).itemsize
    o_bytes = jnp.dtype(out_dtype).itemsize
    param_bytes = sum(int(p.size) * p.dtype.itemsize for p in params)
    max_feat = max([in_dim] + [int(w.shape[0]) for w in weights])
    vmem_need = (2 * tile * in_dim * x_bytes          # double-buffered x blocks
                 + 2 * out_dim * tile * o_bytes       # double-buffered out blocks
                 + param_bytes                        # whole-resident weights/biases
                 + 4 * tile * max_feat * 4)           # transpose/activation headroom
    vmem_limit = int(min(64 * 2**20, max(2 * vmem_need, 16 * 2**20)))
    # TODO(synk): for non-toy hidden dims (>~2k) whole-resident weights can exceed
    # the VMEM budget; fall back to K/N-tiling the large weight matrices instead.

    flops = 2 * B * sum(int(w.shape[0]) * int(w.shape[1]) for w in weights)
    bytes_accessed = B * in_dim * x_bytes + param_bytes + B * out_dim * o_bytes

    fn = pl.pallas_call(
        _make_mlp_kernel(num_layers, activation, compute_dtype),
        out_shape=jax.ShapeDtypeStruct((out_dim, B), out_dtype),
        grid=(grid,),
        in_specs=in_specs,
        out_specs=out_spec,
        compiler_params=pltpu.CompilerParams(
            dimension_semantics=("parallel",),   # shard batch axis across TCs (v7x)
            vmem_limit_bytes=vmem_limit,
        ),
        cost_estimate=pl.CostEstimate(
            flops=flops, transcendentals=0, bytes_accessed=bytes_accessed),
    )
    out = fn(x, *params)                  # (out_dim, B), lane-dense stores in-kernel
    if return_feature_major:
        return out
    return out.T                          # tiny (out_dim, B) -> (B, out_dim)


# ----------------------------------------------------------------------------
# Parameter init (mirrors nn.Linear's U(-1/sqrt(fan_in), +) init, deterministic)
# ----------------------------------------------------------------------------
def init_mlp_params(key, input_dim, hidden_dims, output_dim):
    dims = [input_dim] + list(hidden_dims) + [output_dim]
    weights, biases = [], []
    for i in range(len(dims) - 1):
        fan_in, fan_out = dims[i], dims[i + 1]
        key, kw, kb = jax.random.split(key, 3)
        bound = 1.0 / jnp.sqrt(fan_in)
        # torch-native nn.Linear layout: (out_features, in_features)
        w = jax.random.uniform(kw, (fan_out, fan_in), jnp.float32, -bound, bound)
        b = jax.random.uniform(kb, (fan_out,), jnp.float32, -bound, bound)
        weights.append(w)
        biases.append(b)
    return weights, biases


# Pure-JAX reference. use_bf16=True reproduces the kernel's bf16-operand /
# f32-accumulate numerics for a tight comparison.
def mlp_ref(x, weights, biases, *, use_bf16=False):
    cdt = jnp.bfloat16 if use_bf16 else jnp.float32
    h = x.astype(cdt)
    for i, (w, b) in enumerate(zip(weights, biases)):
        acc = jnp.dot(h, w.astype(cdt).T, preferred_element_type=jnp.float32) + b
        if i < len(weights) - 1:
            h = jnp.maximum(acc, 0.0).astype(cdt)
        else:
            h = acc
    return h


if __name__ == "__main__":
    key = jax.random.PRNGKey(0)
    k1, k2, kp, k3 = jax.random.split(key, 4)

    # MLP(input_dim=32, hidden_dims=[32, 32], output_dim=8, activation_class=nn.ReLU)
    batch = 16
    d1, d2 = 16, 16              # two forward args, hstacked -> input_dim = 32
    hidden_dims = [32, 32]
    output_dim = 8

    x1 = jax.random.normal(k1, (batch, d1), jnp.float32)
    x2 = jax.random.normal(k2, (batch, d2), jnp.float32)
    weights, biases = init_mlp_params(kp, d1 + d2, hidden_dims, output_dim)

    # torch.hstack(args): feature-axis concat for 2-D inputs (plain JAX glue)
    x = jnp.hstack([x1, x2])

    # Small-batch path (single full block).
    out = mlp_pallas(x, weights, biases, use_bf16=True)   # bf16 MXU, f32 accumulate
    out = jax.block_until_ready(out)

    ref_matched = mlp_ref(x, weights, biases, use_bf16=True)
    ref_f32 = mlp_ref(x, weights, biases, use_bf16=False)

    assert out.shape == (batch, output_dim)
    assert jnp.allclose(out, ref_matched, atol=1e-3, rtol=1e-3)   # numerics-matched
    assert jnp.allclose(out, ref_f32, atol=1e-1, rtol=1e-1)       # sanity vs pure f32

    # Multi-step grid path (>= 2 "parallel" steps so both v7x TensorCores get work).
    big_b = 512
    xb = jax.random.normal(k3, (big_b, d1 + d2), jnp.float32)
    outb = jax.block_until_ready(mlp_pallas(xb, weights, biases, use_bf16=True))
    refb = mlp_ref(xb, weights, biases, use_bf16=True)
    assert outb.shape == (big_b, output_dim)
    assert jnp.allclose(outb, refb, atol=1e-3, rtol=1e-3)

    print("KERNEL_OK")
</pallas_src>

<mosaic_0001>
module attributes {stable_mosaic.version = 11 : i64} {
  func.func @kernel(%arg0: i32, %arg1: memref<16x32xf32, #tpu.memory_space<vmem>>, %arg2: memref<32x32xbf16, #tpu.memory_space<vmem>>, %arg3: memref<32x1xf32, #tpu.memory_space<vmem>>, %arg4: memref<32x32xbf16, #tpu.memory_space<vmem>>, %arg5: memref<32x1xf32, #tpu.memory_space<vmem>>, %arg6: memref<8x32xbf16, #tpu.memory_space<vmem>>, %arg7: memref<8x1xf32, #tpu.memory_space<vmem>>, %arg8: memref<8x16xf32, #tpu.memory_space<vmem>>) attributes {dimension_semantics = [#tpu.dimension_semantics<parallel>], iteration_bounds = array<i64: 1>, scalar_prefetch = 0 : i64, scratch_operands = 0 : i64, tpu.core_type = #tpu.core_type<tc>, window_params = [{transform_indices = @transform_0, window_bounds = array<i64: 16, 32>}, {pipeline_mode = #tpu.pipeline_mode<synchronous>, transform_indices = @transform_1, window_bounds = array<i64: 32, 32>}, {pipeline_mode = #tpu.pipeline_mode<synchronous>, transform_indices = @transform_2, window_bounds = array<i64: 32, 1>}, {pipeline_mode = #tpu.pipeline_mode<synchronous>, transform_indices = @transform_3, window_bounds = array<i64: 32, 32>}, {pipeline_mode = #tpu.pipeline_mode<synchronous>, transform_indices = @transform_4, window_bounds = array<i64: 32, 1>}, {pipeline_mode = #tpu.pipeline_mode<synchronous>, transform_indices = @transform_5, window_bounds = array<i64: 8, 32>}, {pipeline_mode = #tpu.pipeline_mode<synchronous>, transform_indices = @transform_6, window_bounds = array<i64: 8, 1>}, {transform_indices = @transform_7, window_bounds = array<i64: 8, 16>}]} {
    %c0 = arith.constant 0 : index
    %c0_0 = arith.constant 0 : index
    %0 = vector.load %arg1[%c0, %c0_0] : memref<16x32xf32, #tpu.memory_space<vmem>>, vector<16x32xf32>
    %1 = tpu.transpose %0, [1, 0] : vector<16x32xf32> -> vector<32x16xf32>
    %2 = arith.truncf %1 : vector<32x16xf32> to vector<32x16xbf16>
    %c0_1 = arith.constant 0 : index
    %c0_2 = arith.constant 0 : index
    %3 = vector.load %arg2[%c0_1, %c0_2] : memref<32x32xbf16, #tpu.memory_space<vmem>>, vector<32x32xbf16>
    %c0_3 = arith.constant 0 : index
    %c0_4 = arith.constant 0 : index
    %4 = vector.load %arg3[%c0_3, %c0_4] : memref<32x1xf32, #tpu.memory_space<vmem>>, vector<32x1xf32>
    %cst = arith.constant dense<0.000000e+00> : vector<32x16xf32>
    %5 = tpu.matmul %3, %2, %cst {dimension_numbers = #tpu.dot_dimension_numbers<[1], [0], [0], [1], [0, 0, 1, 1], [], []>} : vector<32x32xbf16>, vector<32x16xbf16>, vector<32x16xf32> -> vector<32x16xf32>
    %6 = vector.broadcast %4 : vector<32x1xf32> to vector<32x16xf32>
    %7 = arith.addf %5, %6 : vector<32x16xf32>
    %cst_5 = arith.constant 0.000000e+00 : f32
    %8 = vector.broadcast %cst_5 : f32 to vector<32x16xf32>
    %9 = arith.maximumf %7, %8 : vector<32x16xf32>
    %10 = arith.truncf %9 : vector<32x16xf32> to vector<32x16xbf16>
    %c0_6 = arith.constant 0 : index
    %c0_7 = arith.constant 0 : index
    %11 = vector.load %arg4[%c0_6, %c0_7] : memref<32x32xbf16, #tpu.memory_space<vmem>>, vector<32x32xbf16>
    %c0_8 = arith.constant 0 : index
    %c0_9 = arith.constant 0 : index
    %12 = vector.load %arg5[%c0_8, %c0_9] : memref<32x1xf32, #tpu.memory_space<vmem>>, vector<32x1xf32>
    %cst_10 = arith.constant dense<0.000000e+00> : vector<32x16xf32>
    %13 = tpu.matmul %11, %10, %cst_10 {dimension_numbers = #tpu.dot_dimension_numbers<[1], [0], [0], [1], [0, 0, 1, 1], [], []>} : vector<32x32xbf16>, vector<32x16xbf16>, vector<32x16xf32> -> vector<32x16xf32>
    %14 = vector.broadcast %12 : vector<32x1xf32> to vector<32x16xf32>
    %15 = arith.addf %13, %14 : vector<32x16xf32>
    %cst_11 = arith.constant 0.000000e+00 : f32
    %16 = vector.broadcast %cst_11 : f32 to vector<32x16xf32>
    %17 = arith.maximumf %15, %16 : vector<32x16xf32>
    %18 = arith.truncf %17 : vector<32x16xf32> to vector<32x16xbf16>
    %c0_12 = arith.constant 0 : index
    %c0_13 = arith.constant 0 : index
    %19 = vector.load %arg6[%c0_12, %c0_13] : memref<8x32xbf16, #tpu.memory_space<vmem>>, vector<8x32xbf16>
    %c0_14 = arith.constant 0 : index
    %c0_15 = arith.constant 0 : index
    %20 = vector.load %arg7[%c0_14, %c0_15] : memref<8x1xf32, #tpu.memory_space<vmem>>, vector<8x1xf32>
    %cst_16 = arith.constant dense<0.000000e+00> : vector<8x16xf32>
    %21 = tpu.matmul %19, %18, %cst_16 {dimension_numbers = #tpu.dot_dimension_numbers<[1], [0], [0], [1], [0, 0, 1, 1], [], []>} : vector<8x32xbf16>, vector<32x16xbf16>, vector<8x16xf32> -> vector<8x16xf32>
    %22 = vector.broadcast %20 : vector<8x1xf32> to vector<8x16xf32>
    %23 = arith.addf %21, %22 : vector<8x16xf32>
    %c0_17 = arith.constant 0 : index
    %c0_18 = arith.constant 0 : index
    %24 = vector.load %arg8[%c0_17, %c0_18] : memref<8x16xf32, #tpu.memory_space<vmem>>, vector<8x16xf32>
    tpu.vector_store %arg8[%c0_17, %c0_18], %23 {strides = array<i32>} : memref<8x16xf32, #tpu.memory_space<vmem>>, vector<8x16xf32>,
    return
  }
  func.func @transform_0(%arg0: i32) -> (i32, i32) {
    %c0_i32 = arith.constant 0 : i32
    %c0_i32_0 = arith.constant 0 : i32
    return %arg0, %c0_i32 : i32, i32
  }
  func.func @transform_1(%arg0: i32) -> (i32, i32) {
    %c0_i32 = arith.constant 0 : i32
    %c0_i32_0 = arith.constant 0 : i32
    %c0_i32_1 = arith.constant 0 : i32
    return %c0_i32, %c0_i32_0 : i32, i32
  }
  func.func @transform_2(%arg0: i32) -> (i32, i32) {
    %c0_i32 = arith.constant 0 : i32
    %c0_i32_0 = arith.constant 0 : i32
    %c0_i32_1 = arith.constant 0 : i32
    return %c0_i32, %c0_i32_0 : i32, i32
  }
  func.func @transform_3(%arg0: i32) -> (i32, i32) {
    %c0_i32 = arith.constant 0 : i32
    %c0_i32_0 = arith.constant 0 : i32
    %c0_i32_1 = arith.constant 0 : i32
    return %c0_i32, %c0_i32_0 : i32, i32
  }
  func.func @transform_4(%arg0: i32) -> (i32, i32) {
    %c0_i32 = arith.constant 0 : i32
    %c0_i32_0 = arith.constant 0 : i32
    %c0_i32_1 = arith.constant 0 : i32
    return %c0_i32, %c0_i32_0 : i32, i32
  }
  func.func @transform_5(%arg0: i32) -> (i32, i32) {
    %c0_i32 = arith.constant 0 : i32
    %c0_i32_0 = arith.constant 0 : i32
    %c0_i32_1 = arith.constant 0 : i32
    return %c0_i32, %c0_i32_0 : i32, i32
  }
  func.func @transform_6(%arg0: i32) -> (i32, i32) {
    %c0_i32 = arith.constant 0 : i32
    %c0_i32_0 = arith.constant 0 : i32
    %c0_i32_1 = arith.constant 0 : i32
    return %c0_i32, %c0_i32_0 : i32, i32
  }
  func.func @transform_7(%arg0: i32) -> (i32, i32) {
    %c0_i32 = arith.constant 0 : i32
    %c0_i32_0 = arith.constant 0 : i32
    return %c0_i32, %arg0 : i32, i32
  }
}

</mosaic_0001>

<bundles_post_ra>
// kernel: tpu_custom_call.1
= control target key start
LH: loop header
LB: loop body
LE: loop exit
PB: predicated region body
PF: predicated region fallthrough
CT: control target
= control target key end

     0   :  { %s516_s0 = inlined_call_operand.vmem [shape: f32[16,32], index: 0, kind: input, shape index: {}]   ;;  %s517_s1 = inlined_call_operand.vmem [shape: bf16[32,32], index: 1, kind: input, shape index: {}]   ;;  %s518_s2 = inlined_call_operand.vmem [shape: f32[32,1], index: 2, kind: input, shape index: {}]   ;;  %s519_s3 = inlined_call_operand.vmem [shape: bf16[32,32], index: 3, kind: input, shape index: {}]   ;;  %s520_s4 = inlined_call_operand.vmem [shape: f32[32,1], index: 4, kind: input, shape index: {}]   ;;  %s521_s5 = inlined_call_operand.vmem [shape: bf16[8,32], index: 5, kind: input, shape index: {}]   ;;  %s522_s6 = inlined_call_operand.vmem [shape: f32[8,1], index: 6, kind: input, shape index: {}]   ;;  %s523_s7 = inlined_call_operand.hbm [shape: f32[8,16], index: 7, kind: output, shape index: {}]  }
   0x1   :  { %v28_v0 = vld [vmem:[%s516_s0] sm:$0xff]  ;;  %v29_v1 = vld [vmem:[%s516_s0 + $0x8] sm:$0xff] }
   0x2   :  { %30 = vxpose.xlu0.b32.start [1/2] (short) (narrow) %v28_v0, 32 }
   0x3   :  { %12 = vsyncpa [#allocation3], 0  ;;  %v379_v2 = vld [vmem:[%s517_s1] sm:$0xff]   ;;  %vm102_vm0 = vcmask 261120   ;;  %v407_v4 = vmov 0   ;;  %v69_v5 = vld [vmem:[%s518_s2 + $0x8] sm:$0xff] }
   0x4   :  { %353 = vmatprep.mubr.msk.bf16.mxu0 %vm102_vm0, %v379_v2  ;;  %v68_v3 = vld [vmem:[%s518_s2] sm:$0xff]  ;;  %377 = vset.pattern.permute.xlu1 %v407_v4  ;;  %v71_v6 = vld [vmem:[%s518_s2 + $0x18] sm:$0xff]  ;;  %v169_v8 = vld [vmem:[%s520_s4 + $0x8] sm:$0xff]  ;;  %v408_v40 = vmov 0.0   ;;  %vm409_vm1 = vmmov 0   ;;  %s410_s27 = smov [#allocation2]  }
   0x5   :  { %74 = vperm.xlu1 %377, %v68_v3   ;;  %v168_v7 = vld [vmem:[%s520_s4] sm:$0xff]  ;;  %v170_v9 = vld [vmem:[%s520_s4 + $0x10] sm:$0xff]  ;;  %v171_v10 = vld [vmem:[%s520_s4 + $0x18] sm:$0xff]  ;;  %s321_s28 = sshll.u32 %s410_s27, 4  ;;  %vm313_vm2 = vcmask 130048   ;;  %s322_s28 = int_to_ptr.vmem [resolvable:$true] %s321_s28 }
   0x6   :  { %31 = vxpose.xlu0.b32.end [2/2] (short) (narrow) %v29_v1, 32  ;;  %v264_v11 = vld [vmem:[%s522_s6] sm:$0xff]  ;;  %v70_v12 = vld [vmem:[%s518_s2 + $0x10] sm:$0xff]  ;;  %v380_v19 = vld [vmem:[%s517_s1 + $0x8] sm:$0xff]   ;;  %s383_s29 = scalar_lea.vmem %s322_s28, 128  ;;  %p388_p1 = scmp.lt.s32.totalorder %s322_s28, %s322_s28 }
   0x7   :  { %v381_v20 = vld [vmem:[%s519_s3] sm:$0xff]   ;;  %v382_v39 = vld [vmem:[%s519_s3 + $0x8] sm:$0xff]   ;;  %p384_p0 = scmp.ne.s32.totalorder %s322_s28, %s383_s29  ;;  %p389_p2 = scmp.lt.s32.totalorder %s383_s29, %s383_s29 }
   0x8   :  { %361 = vmatprep.mubr.msk.bf16.mxu1 %vm102_vm0, %v381_v20  ;;  %v263_v59 = vld [vmem:[%s521_s5] sm:$0xf] }
   0x9   :  { %79 = vperm.xlu1 %377, %v69_v5   ;;  %p390_p3 = por %p389_p2, %p388_p1 }
   0xb   :  { %p391_p4 = pnand %p390_p3, %p384_p0 }
   0xd   :  { %89 = vperm.xlu1 %377, %v71_v6  }
  0x11   :  { %174 = vperm.xlu1 %377, %v168_v7  }
  0x15   :  { %179 = vperm.xlu1 %377, %v169_v8  }
  0x19   :  { %184 = vperm.xlu1 %377, %v170_v9  }
  0x1d   :  { %189 = vperm.xlu1 %377, %v171_v10  }
  0x21   :  { %267 = vperm.xlu1 %377, %v264_v11  }
  0x2f   :  { %378 = vset.pattern.permute.xlu0 %v407_v4 }
  0x37   :  { %84 = vperm.xlu0 %378, %v70_v12  }
  0x82   :  { %v46_v13 = vpop.trf.xlu0 }
  0x84   :  { %v75_v21 = vpop.permute.xlu1 %74 }
  0x86   :  { %v47_v14 = vpop.trf.xlu0 }
  0x87   :  { %v62_v15 = vpack.c.bf16 %v47_v14, %v46_v13 }
  0x88   :  { %v80_v22 = vpop.permute.xlu1 %79 }
  0x89   :  { %349 = vmatprep.subr.bf16.mxu0 %v62_v15 }
  0x8a   :  { %350 = vmatpush3.bf16.msra.mxu0 %v62_v15  ;;  %v48_v16 = vpop.trf.xlu0 }
  0x8c   :  { %v90_v27 = vpop.permute.xlu1 %89 }
  0x8e   :  { %v49_v17 = vpop.trf.xlu0 }
  0x8f   :  { %v63_v18 = vpack.c.bf16 %v49_v17, %v48_v16 }
  0x90   :  { %v175_v41 = vpop.permute.xlu1 %174 }
  0x91   :  { %351 = vmatprep.subr.bf16.mxu0 %v63_v18 }
  0x92   :  { %352 = vmatpush3.bf16.msra.mxu0 %v63_v18 }
  0x93   :  { %365 = vmatprep.subr.bf16.mxu0 %v408_v40 }
  0x94   :  { %v180_v42 = vpop.permute.xlu1 %179 }
  0x95   :  { %354 = vmatmul.mubr.msk.bf16.vlgmr.msra.gmra.mrb[0].mxu0 %vm102_vm0, %v380_v19 }
  0x96   :  { %369 = vmatprep.mubr.msk.bf16.mxu0 %vm409_vm1, %v408_v40 }
  0x98   :  { %v185_v43 = vpop.permute.xlu1 %184 }
  0x9c   :  { %v190_v47 = vpop.permute.xlu1 %189 }
  0xa0   :  { %v268_v60 = vpop.permute.xlu1 %267 }
  0xb6   :  { %v85_v23 = vpop.permute.xlu0 %84 }
 0x168   :  { %v355_v24 = vpop.f32.mrb[0].mxu0 }
 0x169   :  { %v152_v25 = vadd.f32 %v355_v24, %v85_v23  ;;  %v143_v26 = vpop.f32.mrb[1].mxu0 }
 0x16a   :  { %v144_v28 = vadd.f32 %v143_v26, %v75_v21  ;;  %v356_v29 = vpop.f32.mrb[2].mxu0 }
 0x16b   :  { %v155_v30 = vadd.f32 %v356_v29, %v90_v27  ;;  %v146_v31 = vpop.f32.mrb[3].mxu0  ;;  %v160_v33 = vmax.f32 %v152_v25, 0.0 }
 0x16c   :  { %v147_v32 = vadd.f32 %v146_v31, %v80_v22  ;;  %v158_v35 = vmax.f32 %v144_v28, 0.0 }
 0x16d   :  { %v161_v34 = vmax.f32 %v155_v30, 0.0 }
 0x16e   :  { %v159_v36 = vmax.f32 %v147_v32, 0.0 }
 0x16f   :  { %v163_v37 = vpack.c.bf16 %v161_v34, %v160_v33 }
 0x170   :  { %v162_v38 = vpack.c.bf16 %v159_v36, %v158_v35 }
 0x172   :  { %357 = vmatprep.subr.bf16.mxu1 %v162_v38 }
 0x173   :  { %358 = vmatpush3.bf16.msra.mxu1 %v162_v38 }
 0x174   :  { %359 = vmatprep.subr.bf16.mxu1 %v163_v37 }
 0x177   :  { %360 = vmatpush3.bf16.msra.mxu1 %v163_v37 }
 0x17a   :  { %362 = vmatmul.mubr.msk.bf16.vlgmr.msra.gmra.mrb[0].mxu1 %vm102_vm0, %v382_v39 }
 0x24d   :  { %v363_v44 = vpop.f32.mrb[0].mxu1 }
 0x24e   :  { %v251_v45 = vadd.f32 %v363_v44, %v185_v43  ;;  %v242_v46 = vpop.f32.mrb[1].mxu1 }
 0x24f   :  { %v243_v48 = vadd.f32 %v242_v46, %v175_v41  ;;  %v364_v49 = vpop.f32.mrb[2].mxu1 }
 0x250   :  { %v254_v50 = vadd.f32 %v364_v49, %v190_v47  ;;  %v245_v51 = vpop.f32.mrb[3].mxu1  ;;  %v259_v53 = vmax.f32 %v251_v45, 0.0 }
 0x251   :  { %v246_v52 = vadd.f32 %v245_v51, %v180_v42  ;;  %v257_v55 = vmax.f32 %v243_v48, 0.0 }
 0x252   :  { %v260_v54 = vmax.f32 %v254_v50, 0.0 }
 0x253   :  { %v258_v56 = vmax.f32 %v246_v52, 0.0 }
 0x254   :  { %v262_v57 = vpack.c.bf16 %v260_v54, %v259_v53 }
 0x255   :  { %v261_v58 = vpack.c.bf16 %v258_v56, %v257_v55 }
 0x257   :  { %366 = vmatpush3.bf16.msra.mxu0 %v261_v58 }
 0x258   :  { %367 = vmatprep.subr.bf16.mxu0 %v408_v40 }
 0x25b   :  { %368 = vmatpush3.bf16.msra.mxu0 %v262_v57 }
 0x25e   :  { %370 = vmatmul.mubr.msk.bf16.vlgmr.msra.gmra.mrb[4].mxu0 %vm102_vm0, %v263_v59 }
 0x331   :  { %v307_v61 = vpop.f32.mrb[4].mxu0 }
 0x332   :  { %v308_v62 = vadd.f32 %v307_v61, %v268_v60  ;;  %v371_v63 = vpop.f32.mrb[5].mxu0 }
 0x333   :  { %v310_v0 = vpop.f32.mrb[6].mxu0 }
 0x334   :  { %v372_v1 = vpop.f32.mrb[7].mxu0  ;;  %314 = vst.msk [vmem:[#allocation2] sm:$0xff] %vm313_vm2, %v308_v62 }
 0x335   :  { %394 = shalt.err (!%p391_p4)
}
 0x336   :  { %s395_s8 = scalar_lea.hbm %s523_s7, 128 }
 0x337   :  { %p396_p5 = scmp.ne.s32.totalorder %s523_s7, %s395_s8  ;;  %p399_p6 = scmp.lt.u32.totalorder %s395_s8, %s523_s7 }
 0x339   :  { %p401_p7 = pnand %p399_p6, %p396_p5 }
 0x33b   :  { %404 = shalt.err (!%p401_p7)
}
 0x33c   :  { %324 = dma.vmem_to_hbm [thread:$0]  %s322_s28, 128, %s523_s7, [#allocation3]  }
 0x33d   :  { %405 = dma.done.wait [#allocation3], 128  }
 0x33e   :  { %406 = vsyncadd [#allocation3], 4294967168 }
 0x33f   :  { %328 = vsyncpa [#allocation3], 1 }

</bundles_post_ra>
